<compile_context>
chip_gen: v7x
topology: tpu7x:2x2x1
jax: 0.10.0
libtpu: 0.0.40
codegen_flags: <defaults>
</compile_context>

<pallas_src>
import functools

import jax
import jax.numpy as jnp
from jax.experimental import pallas as pl
from jax.experimental.pallas import tpu as pltpu

_LANE = 128


def _dict_loss_kernel(p_ref, t_ref, o_ref, inter_acc, sq_acc,
                      *, n_rows, smooth, need_mask):
    """Per-batch accumulating reduction.

    p_ref, t_ref : (1, TR, 128) sublane-dense tiles of pred / target.
    o_ref        : (1, 1, 128) per-batch output (loss term broadcast over lanes).
    inter_acc    : (1, 128) f32 per-lane partial sums of p*t.
    sq_acc       : (1, 128) f32 per-lane partial sums of p*p + t*t.
    """
    ki = pl.program_id(1)

    @pl.when(ki == 0)
    def _():
        inter_acc[...] = jnp.zeros_like(inter_acc)
        sq_acc[...] = jnp.zeros_like(sq_acc)

    p = p_ref[0].astype(jnp.float32)   # (TR, 128)
    t = t_ref[0].astype(jnp.float32)

    if need_mask:
        # Ragged last tile along the row axis: rows beyond n_rows hold
        # out-of-bounds garbage -> zero them (sum-neutral).
        tr = p.shape[0]
        rows = jax.lax.broadcasted_iota(jnp.int32, p.shape, 0) + ki * tr
        valid = rows < n_rows
        p = jnp.where(valid, p, 0.0)
        t = jnp.where(valid, t, 0.0)

    # Per-lane partial sums (the 128 -> 1 lane reduction is deferred to the
    # finalize step; square-sums are fused into one accumulator).
    inter_acc[...] += jnp.sum(p * t, axis=0, keepdims=True)
    sq_acc[...] += jnp.sum(p * p + t * t, axis=0, keepdims=True)

    @pl.when(ki == pl.num_programs(1) - 1)
    def _():
        inter = jnp.sum(inter_acc[...])
        nu = 2.0 * inter + smooth
        de = jnp.sum(sq_acc[...]) + smooth
        loss_b = 1.0 - nu / de
        o_ref[...] = jnp.zeros_like(o_ref) + loss_b


def dict_loss(pred, target, *, smooth=1.0, loss_weight=1.0, tile_rows=2048):
    """JAX/Pallas equivalent of DictLoss.forward(pred, target)."""
    assert pred.shape == target.shape
    b = pred.shape[0]

    # Flatten exactly like torch's .view(b, -1) (row-major).
    iflat = pred.reshape(b, -1)
    tflat = target.reshape(b, -1)
    n = iflat.shape[1]

    if n % _LANE != 0:
        # Rare path: feature count not lane-aligned -> minimal zero pad
        # (sum-neutral).  Typical C*H*W maps are already 128-aligned so this
        # extra HBM copy is normally skipped.
        pad = _LANE - n % _LANE
        iflat = jnp.pad(iflat, ((0, 0), (0, pad)))
        tflat = jnp.pad(tflat, ((0, 0), (0, pad)))
        n = n + pad

    r = n // _LANE
    # Sublane-dense view: (B, N) -> (B, R, 128).  Row-major relabel, no copy.
    p3 = iflat.reshape(b, r, _LANE)
    t3 = tflat.reshape(b, r, _LANE)

    # Tile sizing: block = (1, tr, 128) f32 -> tr * 512 bytes per input block.
    # Default tr=2048 => 1 MiB/block; 2 inputs x 2 pipeline buffers = 4 MiB,
    # comfortably inside v5e's 16 MiB scoped default and v7x's 32 MiB / 64 MiB.
    if r >= 8:
        tr = min(int(tile_rows), r)
        tr = max(8, (tr // 8) * 8)          # keep (8, 128) alignment
    else:
        tr = r                              # tiny input: full-extent block
    k_steps = pl.cdiv(r, tr)

    kernel = functools.partial(
        _dict_loss_kernel,
        n_rows=r,
        smooth=float(smooth),
        need_mask=(r % tr != 0),
    )

    itemsize = jnp.dtype(pred.dtype).itemsize
    cost = pl.CostEstimate(
        flops=5 * b * n,
        transcendentals=0,
        bytes_accessed=2 * b * n * itemsize + b * _LANE * 4,
    )

    terms = pl.pallas_call(
        kernel,
        out_shape=jax.ShapeDtypeStruct((b, 1, _LANE), jnp.float32),
        grid_spec=pltpu.PrefetchScalarGridSpec(
            num_scalar_prefetch=0,
            grid=(b, k_steps),
            in_specs=[
                pl.BlockSpec((1, tr, _LANE), lambda bi, ki: (bi, ki, 0)),
                pl.BlockSpec((1, tr, _LANE), lambda bi, ki: (bi, ki, 0)),
            ],
            out_specs=pl.BlockSpec((1, 1, _LANE), lambda bi, ki: (bi, 0, 0)),
            scratch_shapes=[
                pltpu.VMEM((1, _LANE), jnp.float32),   # sum(p*t) per lane
                pltpu.VMEM((1, _LANE), jnp.float32),   # sum(p*p + t*t) per lane
            ],
        ),
        compiler_params=pltpu.CompilerParams(
            dimension_semantics=("parallel", "arbitrary"),
            vmem_limit_bytes=32 * 1024 * 1024,
        ),
        cost_estimate=cost,
    )(p3, t3)

    # Tiny finalize in XLA: mean over batch + loss weight.
    return loss_weight * jnp.mean(terms[:, 0, 0])


def dict_loss_ref(pred, target, *, smooth=1.0, loss_weight=1.0):
    """Pure-JAX reference for verification."""
    b = pred.shape[0]
    iflat = pred.reshape(b, -1).astype(jnp.float32)
    tflat = target.reshape(b, -1).astype(jnp.float32)
    inter = jnp.sum(iflat * tflat, axis=1)
    nu = 2.0 * inter + smooth
    de = jnp.sum(iflat * iflat, axis=1) + jnp.sum(tflat * tflat, axis=1) + smooth
    return loss_weight * jnp.mean(1.0 - nu / de)


if __name__ == "__main__":
    key = jax.random.PRNGKey(0)

    # Case 1: lane-aligned feature count (B, C, H, W) = (2, 4, 16, 16) -> N=1024.
    kp, kt, kp2, kt2 = jax.random.split(key, 4)
    B, C, H, W = 2, 4, 16, 16
    pred = jax.nn.sigmoid(jax.random.normal(kp, (B, C, H, W), dtype=jnp.float32))
    target = (jax.random.uniform(kt, (B, C, H, W)) > 0.5).astype(jnp.float32)

    loss = dict_loss(pred, target, smooth=1.0, loss_weight=1.0)
    loss = jax.block_until_ready(loss)
    ref = dict_loss_ref(pred, target, smooth=1.0, loss_weight=1.0)
    assert jnp.allclose(loss, ref, rtol=1e-5, atol=1e-6), (loss, ref)

    # Case 2: non-aligned feature count -> exercises pad + in-kernel row mask.
    B2, C2, H2, W2 = 2, 3, 24, 24   # N = 1728 (not a multiple of 1024)
    pred2 = jax.nn.sigmoid(jax.random.normal(kp2, (B2, C2, H2, W2), dtype=jnp.float32))
    target2 = (jax.random.uniform(kt2, (B2, C2, H2, W2)) > 0.5).astype(jnp.float32)

    loss2 = dict_loss(pred2, target2, smooth=1.0, loss_weight=0.5, tile_rows=8)
    loss2 = jax.block_until_ready(loss2)
    ref2 = dict_loss_ref(pred2, target2, smooth=1.0, loss_weight=0.5)
    assert jnp.allclose(loss2, ref2, rtol=1e-5, atol=1e-6), (loss2, ref2)

    print("KERNEL_OK")
</pallas_src>

<mosaic_0001>
module attributes {stable_mosaic.version = 11 : i64} {
  func.func @_dict_loss_kernel(%arg0: i32, %arg1: i32, %arg2: memref<1x8x128xf32, #tpu.memory_space<vmem>>, %arg3: memref<1x8x128xf32, #tpu.memory_space<vmem>>, %arg4: memref<1x1x128xf32, #tpu.memory_space<vmem>>, %arg5: memref<1x128xf32, #tpu.memory_space<vmem>>, %arg6: memref<1x128xf32, #tpu.memory_space<vmem>>) attributes {dimension_semantics = [#tpu.dimension_semantics<parallel>, #tpu.dimension_semantics<arbitrary>], iteration_bounds = array<i64: 2, 1>, scalar_prefetch = 0 : i64, scratch_operands = 2 : i64, tpu.core_type = #tpu.core_type<tc>, window_params = [{transform_indices = @transform_0, window_bounds = array<i64: 1, 8, 128>}, {transform_indices = @transform_1, window_bounds = array<i64: 1, 8, 128>}, {transform_indices = @transform_2, window_bounds = array<i64: 1, 1, 128>}]} {
    %c0_i32 = arith.constant 0 : i32
    %0 = arith.cmpi eq, %arg1, %c0_i32 : i32
    %1 = arith.extui %0 : i1 to i32
    %c0_i32_0 = arith.constant 0 : i32
    %2 = arith.cmpi ne, %1, %c0_i32_0 : i32
    scf.if %2 {
      %cst_17 = arith.constant 0.000000e+00 : f32
      %24 = vector.broadcast %cst_17 : f32 to vector<1x128xf32>
      %c0_18 = arith.constant 0 : index
      %c0_19 = arith.constant 0 : index
      %25 = vector.load %arg5[%c0_18, %c0_19] : memref<1x128xf32, #tpu.memory_space<vmem>>, vector<1x128xf32>
      tpu.vector_store %arg5[%c0_18, %c0_19], %24 {strides = array<i32>} : memref<1x128xf32, #tpu.memory_space<vmem>>, vector<1x128xf32>,
      %cst_20 = arith.constant 0.000000e+00 : f32
      %26 = vector.broadcast %cst_20 : f32 to vector<1x128xf32>
      %c0_21 = arith.constant 0 : index
      %c0_22 = arith.constant 0 : index
      %27 = vector.load %arg6[%c0_21, %c0_22] : memref<1x128xf32, #tpu.memory_space<vmem>>, vector<1x128xf32>
      tpu.vector_store %arg6[%c0_21, %c0_22], %26 {strides = array<i32>} : memref<1x128xf32, #tpu.memory_space<vmem>>, vector<1x128xf32>,
    } else {
    }
    %c0 = arith.constant 0 : index
    %c0_1 = arith.constant 0 : index
    %c0_2 = arith.constant 0 : index
    %3 = vector.load %arg2[%c0, %c0_1, %c0_2] : memref<1x8x128xf32, #tpu.memory_space<vmem>>, vector<1x8x128xf32>
    %4 = vector.shape_cast %3 : vector<1x8x128xf32> to vector<8x128xf32>
    %c0_3 = arith.constant 0 : index
    %c0_4 = arith.constant 0 : index
    %c0_5 = arith.constant 0 : index
    %5 = vector.load %arg3[%c0_3, %c0_4, %c0_5] : memref<1x8x128xf32, #tpu.memory_space<vmem>>, vector<1x8x128xf32>
    %6 = vector.shape_cast %5 : vector<1x8x128xf32> to vector<8x128xf32>
    %c0_6 = arith.constant 0 : index
    %c0_7 = arith.constant 0 : index
    %7 = vector.load %arg5[%c0_6, %c0_7] : memref<1x128xf32, #tpu.memory_space<vmem>>, vector<1x128xf32>
    %8 = arith.mulf %4, %6 : vector<8x128xf32>
    %cst = arith.constant dense<0.000000e+00> : vector<128xf32>
    %9 = vector.multi_reduction <add>, %8, %cst [0] : vector<8x128xf32> to vector<128xf32>
    %10 = vector.shape_cast %9 : vector<128xf32> to vector<1x128xf32>
    %11 = arith.addf %7, %10 : vector<1x128xf32>
    %c0_8 = arith.constant 0 : index
    %c0_9 = arith.constant 0 : index
    %12 = vector.load %arg5[%c0_8, %c0_9] : memref<1x128xf32, #tpu.memory_space<vmem>>, vector<1x128xf32>
    tpu.vector_store %arg5[%c0_8, %c0_9], %11 {strides = array<i32>} : memref<1x128xf32, #tpu.memory_space<vmem>>, vector<1x128xf32>,
    %c0_10 = arith.constant 0 : index
    %c0_11 = arith.constant 0 : index
    %13 = vector.load %arg6[%c0_10, %c0_11] : memref<1x128xf32, #tpu.memory_space<vmem>>, vector<1x128xf32>
    %14 = arith.mulf %4, %4 : vector<8x128xf32>
    %15 = arith.mulf %6, %6 : vector<8x128xf32>
    %16 = arith.addf %14, %15 : vector<8x128xf32>
    %cst_12 = arith.constant dense<0.000000e+00> : vector<128xf32>
    %17 = vector.multi_reduction <add>, %16, %cst_12 [0] : vector<8x128xf32> to vector<128xf32>
    %18 = vector.shape_cast %17 : vector<128xf32> to vector<1x128xf32>
    %19 = arith.addf %13, %18 : vector<1x128xf32>
    %c0_13 = arith.constant 0 : index
    %c0_14 = arith.constant 0 : index
    %20 = vector.load %arg6[%c0_13, %c0_14] : memref<1x128xf32, #tpu.memory_space<vmem>>, vector<1x128xf32>
    tpu.vector_store %arg6[%c0_13, %c0_14], %19 {strides = array<i32>} : memref<1x128xf32, #tpu.memory_space<vmem>>, vector<1x128xf32>,
    %c0_i32_15 = arith.constant 0 : i32
    %21 = arith.cmpi eq, %arg1, %c0_i32_15 : i32
    %22 = arith.extui %21 : i1 to i32
    %c0_i32_16 = arith.constant 0 : i32
    %23 = arith.cmpi ne, %22, %c0_i32_16 : i32
    scf.if %23 {
      %c0_17 = arith.constant 0 : index
      %c0_18 = arith.constant 0 : index
      %24 = vector.load %arg5[%c0_17, %c0_18] : memref<1x128xf32, #tpu.memory_space<vmem>>, vector<1x128xf32>
      %25 = vector.shape_cast %24 : vector<1x128xf32> to vector<1x1x128xf32>
      %cst_19 = arith.constant dense<0.000000e+00> : vector<1xf32>
      %26 = vector.multi_reduction <add>, %25, %cst_19 [1, 2] : vector<1x1x128xf32> to vector<1xf32>
      %27 = vector.shape_cast %26 : vector<1xf32> to vector<1x1x1xf32>
      %28 = vector.extract %27[0, 0, 0] : f32 from vector<1x1x1xf32>
      %cst_20 = arith.constant 2.000000e+00 : f32
      %29 = arith.mulf %cst_20, %28 : f32
      %cst_21 = arith.constant 1.000000e+00 : f32
      %30 = arith.addf %29, %cst_21 : f32
      %c0_22 = arith.constant 0 : index
      %c0_23 = arith.constant 0 : index
      %31 = vector.load %arg6[%c0_22, %c0_23] : memref<1x128xf32, #tpu.memory_space<vmem>>, vector<1x128xf32>
      %32 = vector.shape_cast %31 : vector<1x128xf32> to vector<1x1x128xf32>
      %cst_24 = arith.constant dense<0.000000e+00> : vector<1xf32>
      %33 = vector.multi_reduction <add>, %32, %cst_24 [1, 2] : vector<1x1x128xf32> to vector<1xf32>
      %34 = vector.shape_cast %33 : vector<1xf32> to vector<1x1x1xf32>
      %35 = vector.extract %34[0, 0, 0] : f32 from vector<1x1x1xf32>
      %cst_25 = arith.constant 1.000000e+00 : f32
      %36 = arith.addf %35, %cst_25 : f32
      %37 = arith.divf %30, %36 : f32
      %cst_26 = arith.constant 1.000000e+00 : f32
      %38 = arith.subf %cst_26, %37 : f32
      %cst_27 = arith.constant 0.000000e+00 : f32
      %39 = vector.broadcast %cst_27 : f32 to vector<1x1x128xf32>
      %40 = vector.broadcast %38 : f32 to vector<1x1x128xf32>
      %41 = arith.addf %39, %40 : vector<1x1x128xf32>
      %c0_28 = arith.constant 0 : index
      %c0_29 = arith.constant 0 : index
      %c0_30 = arith.constant 0 : index
      %42 = vector.load %arg4[%c0_28, %c0_29, %c0_30] : memref<1x1x128xf32, #tpu.memory_space<vmem>>, vector<1x1x128xf32>
      tpu.vector_store %arg4[%c0_28, %c0_29, %c0_30], %41 {strides = array<i32>} : memref<1x1x128xf32, #tpu.memory_space<vmem>>, vector<1x1x128xf32>,
    } else {
    }
    return
  }
  func.func @transform_0(%arg0: i32, %arg1: i32) -> (i32, i32, i32) {
    %c0_i32 = arith.constant 0 : i32
    %c0_i32_0 = arith.constant 0 : i32
    return %arg0, %arg1, %c0_i32 : i32, i32, i32
  }
  func.func @transform_1(%arg0: i32, %arg1: i32) -> (i32, i32, i32) {
    %c0_i32 = arith.constant 0 : i32
    %c0_i32_0 = arith.constant 0 : i32
    return %arg0, %arg1, %c0_i32 : i32, i32, i32
  }
  func.func @transform_2(%arg0: i32, %arg1: i32) -> (i32, i32, i32) {
    %c0_i32 = arith.constant 0 : i32
    %c0_i32_0 = arith.constant 0 : i32
    %c0_i32_1 = arith.constant 0 : i32
    return %arg0, %c0_i32, %c0_i32_0 : i32, i32, i32
  }
}

</mosaic_0001>

<bundles_post_ra>
// kernel: tpu_custom_call.1
= control target key start
LH: loop header
LB: loop body
LE: loop exit
PB: predicated region body
PF: predicated region fallthrough
CT: control target
= control target key end

     0   :  { %7 = vsyncpa [#allocation5], 0  ;;  %s870_s0 = inlined_call_operand.hbm [shape: f32[2,8,128], index: 0, kind: input, shape index: {}]   ;;  %s871_s1 = inlined_call_operand.hbm [shape: f32[2,8,128], index: 1, kind: input, shape index: {}]   ;;  %s872_s2 = inlined_call_operand.hbm [shape: f32[2,1,128], index: 2, kind: output, shape index: {}]  }
   0x1   :  { %9 = vsyncpa [#allocation5 + $0x1], 0 }
   0x2   :  { %10 = vsyncpa [#allocation8], 0 }
   0x3   :  { %12 = vsyncpa [#allocation8 + $0x1], 0 }
   0x4   :  { %13 = vsyncpa [#allocation6], 0 }
   0x5   :  { %15 = vsyncpa [#allocation6 + $0x1], 0  ;;  %s649_s9 = smov 0   ;;  %s651_s10 = smov 0  }
   0x6   :  { %s653_s11 = smov 0   ;;  %s655_s12 = smov 0  }
   0x7   :  { %s657_s13 = smov 0   ;;  %s659_s14 = smov 0  }
   0x8 LB: > { %s392_s15 = sadd.s32 4294967295, %s628_s14   ;;  %s393_s16 = sadd.s32 4294967294, %s628_s14   ;;  %s628_s14 = sphi %s659_s14, %s21_s14   ;;  %s624_s13 = sphi %s657_s13, %s892_s13   ;;  %s620_s12 = sphi %s655_s12, %s891_s12   ;;  %s616_s11 = sphi %s653_s11, %s890_s11   ;;  %s612_s10 = sphi %s651_s10, %s889_s10   ;;  %s608_s9 = sphi %s649_s9, %s888_s9  }
   0x9   : > { %s33_s17 = sadd.s32 1, %s624_s13  ;;  %s42_s18 = sadd.s32 1, %s616_s11 }
   0xa   : > { %p35_p0 = scmp.ge.s32.totalorder %s33_s17, 2  ;;  %p49_p1 = scmp.ne.s32.totalorder %s616_s11, %s612_s10 }
   0xb   : > { %p50_p2 = scmp.eq.s32.totalorder %s628_s14, 0  ;;  %p55_p3 = scmp.ne.s32.totalorder %s612_s10, %s608_s9 }
   0xc   : > { %s894_s17 = smov (%p35_p0, %s33_s17), 0  ;;  %p56_p5 = scmp.eq.s32.totalorder %s392_s15, 0 }
   0xd   : > { %p690_p4 = por %p50_p2, %p49_p1  ;;  %s37_s20 = ssub.s32 %s624_s13, %s894_s17 }
   0xe   : > { %p107_p6 = scmp.eq.s32.totalorder %s392_s15, 1  ;;  %p40_p7 = scmp.eq.s32.totalorder %s37_s20, 0 }
   0xf   : > { %p696_p8 = por %p56_p5, %p55_p3  ;;  %p113_p10 = scmp.eq.s32.totalorder %s393_s16, 1 }
  0x10   : > { %p700_p9 = por %p107_p6, %p49_p1  ;;  %p429_p13 = scmp.lt.s32.totalorder %s628_s14, 2 }
  0x11   : > { %s876_s21 = scalar_select %p696_p8, 1, 0 }
  0x12   : > { %s877_s22 = scalar_select %p700_p9, 1, 0 }
  0x13   : > { %s705_s23 = scalar_select %p40_p7, %s616_s11, %s42_s18  }
  0x14   : > { %p707_p11 = por %p113_p10, %p55_p3  ;;  %s714_s25 = sand.u32 1, %s616_s11  }
  0x15   : > { %s396_s26 = sshll.u32 %s714_s25, 3  ;;  %s397_s27 = sshll.u32 %s624_s13, 7 }
  0x16   : > { %s878_s24 = scalar_select %p707_p11, 1, 0 }
  0x17   : > { %s723_s30 = scalar_lea.hbm %s870_s0, %s397_s27  ;;  %s137_s3 = scalar_lea.vmem [#allocation4], %s396_s26 }
  0x18   : > { %s145_s4 = sshll.u32 %s137_s3, 4  ;;  %p731_p0 = pnand %p429_p13, %p690_p4  ;;  %s727_s4 = int_to_ptr.vmem [resolvable:$true] %s145_s4 }
  0x19   : > { %s134_s6 = scalar_lea.sflag [#allocation5], %s714_s25  ;;  %s482_s7 = scalar_lea.hbm %s723_s30, 128 }
  0x1a   : > { %p483_p3 = scmp.ne.s32.totalorder %s723_s30, %s482_s7  ;;  %p484_p5 = pneg %p731_p0 }
  0x1b   : > { %s487_s16 = scalar_lea.hbm %s870_s0, 256  ;;  %p488_p4 = scmp.lt.u32.totalorder %s723_s30, %s870_s0 }
  0x1c   : > { %p485_p6 = pnand %p484_p5, %p483_p3  ;;  %p489_p10 = scmp.lt.u32.totalorder %s487_s16, %s482_s7 }
  0x1d   : > { %p491_p12 = scmp.lt.u32.totalorder %s482_s7, %s723_s30 }
  0x1e   : > { %p486_p7 = pneg %p485_p6  ;;  %p490_p13 = por %p489_p10, %p488_p4 }
  0x20   : > { %p492_p1 = por %p491_p12, %p490_p13 }
  0x22   : > { %p493_p2 = pnand %p492_p1, %p486_p7 }
  0x24   : > { %496 = shalt.err (!%p493_p2)
}
  0x25   : > { %s497_s20 = scalar_lea.vmem %s727_s4, 128  ;;  %s630_s28 = smov [#allocation4]  }
  0x26   : > { %p498_p3 = scmp.ne.s32.totalorder %s727_s4, %s497_s20  ;;  %s502_s29 = sshll.u32 %s630_s28, 4  ;;  %s503_s29 = int_to_ptr.vmem [resolvable:$false] %s502_s29 }
  0x27   : > { %s504_s3 = scalar_lea.vmem %s503_s29, 256  ;;  %p505_p9 = scmp.lt.s32.totalorder %s727_s4, %s503_s29 }
  0x28   : > { %p500_p6 = pnand %p498_p3, %p484_p5  ;;  %p506_p4 = scmp.lt.s32.totalorder %s504_s3, %s497_s20 }
  0x2a   : > { %p501_p11 = pneg %p500_p6  ;;  %p507_p10 = por %p506_p4, %p505_p9 }
  0x2c   : > { %p508_p12 = pnand %p507_p10, %p501_p11 }
  0x2e   : > { %511 = shalt.err (!%p508_p12)
}
  0x2f   : > { %421 = dma.hbm_to_vmem [thread:$0]  (!%p731_p0), %s723_s30, 128, %s727_s4, %s134_s6  }
  0x30   : > { %p880_p1 = scmp.lt.s32.totalorder %s628_s14, 3  ;;  %p881_p2 = scmp.ge.s32.totalorder %s628_s14, 1 }
  0x31   : > { %s776_s16 = scalar_lea.hbm %s871_s1, %s397_s27  ;;  %s156_s18 = scalar_lea.vmem [#allocation7], %s396_s26 }
  0x32   : > { %p767_p7 = pnand %p881_p2, %p880_p1  ;;  %s164_s19 = sshll.u32 %s156_s18, 4  ;;  %s165_s19 = int_to_ptr.vmem [resolvable:$true] %s164_s19 }
  0x33   : > { %s153_s30 = scalar_lea.sflag [#allocation8], %s714_s25  ;;  %s512_s4 = scalar_lea.hbm %s776_s16, 128 }
  0x34   : > { %s882_s7 = scalar_select %p767_p7, 1, 0 }
  0x35   : > { %p513_p9 = scmp.ne.s32.totalorder %s776_s16, %s512_s4  ;;  %s517_s27 = scalar_lea.hbm %s871_s1, 256 }
  0x36   : > { %p518_p3 = scmp.lt.u32.totalorder %s776_s16, %s871_s1  ;;  %p519_p6 = scmp.lt.u32.totalorder %s517_s27, %s512_s4 }
  0x37   : > { %p515_p11 = pnand %p513_p9, %p484_p5  ;;  %p521_p10 = scmp.lt.u32.totalorder %s512_s4, %s776_s16 }
  0x38   : > { %p520_p4 = por %p519_p6, %p518_p3 }
  0x39   : > { %p516_p13 = pneg %p515_p11 }
  0x3a   : > { %p522_p12 = por %p521_p10, %p520_p4 }
  0x3c   : > { %p523_p1 = pnand %p522_p12, %p516_p13 }
  0x3e   : > { %526 = shalt.err (!%p523_p1)
}
  0x3f   : > { %s527_s25 = scalar_lea.vmem %s165_s19, 128  ;;  %s631_s26 = smov [#allocation7]  }
  0x40   : > { %p528_p2 = scmp.ne.s32.totalorder %s165_s19, %s527_s25  ;;  %s532_s3 = sshll.u32 %s631_s26, 4  ;;  %s533_s3 = int_to_ptr.vmem [resolvable:$false] %s532_s3 }
  0x41   : > { %s534_s8 = scalar_lea.vmem %s533_s3, 256  ;;  %p535_p8 = scmp.lt.s32.totalorder %s165_s19, %s533_s3 }
  0x42   : > { %p530_p9 = pnand %p528_p2, %p484_p5  ;;  %p536_p7 = scmp.lt.s32.totalorder %s534_s8, %s527_s25 }
  0x44   : > { %p531_p11 = pneg %p530_p9  ;;  %p537_p3 = por %p536_p7, %p535_p8 }
  0x46   : > { %p538_p6 = pnand %p537_p3, %p531_p11 }
  0x48   : > { %541 = shalt.err (!%p538_p6)
}
  0x49   : > { %424 = dma.hbm_to_vmem [thread:$0]  (!%p731_p0), %s776_s16, 128, %s165_s19, %s153_s30  }
  0x4a   : > { %p883_p13 = scmp.ne.s32.totalorder %s882_s7, 0 }
  0x4b   : > { %s803_s15 = sand.u32 (!%p883_p13), 1, %s612_s10   ;;  %p884_p5 = scmp.ne.s32.totalorder (!%p883_p13), %s876_s21, 0 }
  0x4c   : > { %173 = sbr.rel (%p883_p13) target bundleno = 403 (0x193), region = 28  ;;  %s401_s18 = sshll.u32 (!%p883_p13), %s803_s15, 3 }
  0x4d   : > { %s176_s4 = scalar_lea.sflag (!%p883_p13), [#allocation5], %s803_s15  ;;  %s179_s6 = scalar_lea.vmem (!%p883_p13), [#allocation4], %s401_s18 }
  0x53   : > { %595 = dma.done.wait (%p884_p5), %s176_s4, 128  }
  0x54   : > { %597 = vsyncadd (%p884_p5), %s176_s4, 4294967168  ;;  %s185_s5 = scalar_lea.sflag [#allocation8], %s803_s15  ;;  %s188_s16 = scalar_lea.vmem [#allocation7], %s401_s18 }
  0x55   : > { %599 = dma.done.wait (%p884_p5), %s185_s5, 128  }
  0x56   : > { %601 = vsyncadd (%p884_p5), %s185_s5, 4294967168  ;;  %v632_v0 = vmov 0.0   ;;  %v219_v1 = vld [vmem:[%s179_s6] sm:$0xff]  ;;  %v220_v2 = vld [vmem:[%s188_s16] sm:$0xff]  ;;  %vm247_vm0 = vcmask 1040384   ;;  %s403_s28 = sshll.u32 %s620_s12, 4 }
  0x57   : > { %217 = vst [vmem:[#allocation2] sm:$0x1] %v632_v0  ;;  %218 = vst [vmem:[#allocation3] sm:$0x1] %v632_v0  ;;  %v222_v3 = vmul.f32 %v220_v2, %v219_v1  ;;  %v232_v4 = vmul.f32 %v219_v1, %v219_v1  ;;  %v233_v5 = vmul.f32 %v220_v2, %v220_v2  ;;  %s212_s25 = scalar_lea.vmem [#allocation9], %s803_s15  ;;  %s821_s4 = scalar_lea.hbm %s872_s2, %s403_s28 }
  0x58   : > { %s293_s26 = sshll.u32 %s212_s25, 4  ;;  %s281_s6 = scalar_lea.sflag [#allocation6], %s803_s15  ;;  %s823_s26 = int_to_ptr.vmem [resolvable:$true] %s293_s26 }
  0x59   : > { %v223_v6 = vrot.slane %v222_v3, 4  ;;  %v234_v7 = vadd.f32 %v233_v5, %v232_v4  ;;  %s542_s5 = scalar_lea.vmem %s823_s26, 16  ;;  %p885_p0 = scmp.ne.s32.totalorder %s877_s22, 0 }
  0x5a   : > { %p543_p8 = scmp.ne.s32.totalorder %s823_s26, %s542_s5  ;;  %s633_s12 = smov [#allocation9]  }
  0x5b   : > { %v224_v8 = vadd.f32 %v223_v6, %v222_v3  ;;  %v235_v9 = vrot.slane %v234_v7, 4  ;;  %s546_s16 = sshll.u32 %s633_s12, 4  ;;  %s547_s16 = int_to_ptr.vmem [resolvable:$false] %s546_s16 }
  0x5c   : > { %p544_p7 = pnand %p543_p8, %p885_p0  ;;  %p549_p10 = scmp.lt.s32.totalorder %s823_s26, %s547_s16 }
  0x5d   : > { %v225_v10 = vrot.slane %v224_v8, 2  ;;  %v236_v11 = vadd.f32 %v235_v9, %v234_v7 }
  0x5e   : > { %v221_v16 = vld [vmem:[#allocation2] sm:$0x1]  ;;  %v231_v19 = vld [vmem:[#allocation3] sm:$0x1]  ;;  %p545_p4 = pneg %p544_p7 }
  0x5f   : > { %v226_v12 = vadd.f32 %v225_v10, %v224_v8  ;;  %v237_v13 = vrot.slane %v236_v11, 2 }
  0x61   : > { %v227_v14 = vrot.slane %v226_v12, 1  ;;  %v238_v15 = vadd.f32 %v237_v13, %v236_v11 }
  0x63   : > { %v228_v17 = vadd.f32 %v227_v14, %v226_v12  ;;  %v239_v18 = vrot.slane %v238_v15, 1 }
  0x65   : > { %v229_v20 = vadd.f32 %v228_v17, %v221_v16  ;;  %v240_v21 = vadd.f32 %v239_v18, %v238_v15 }
  0x67   : > { %230 = vst [vmem:[#allocation2] sm:$0x1] %v229_v20  ;;  %v241_v22 = vadd.f32 %v240_v21, %v231_v19 }
  0x69   : > { %242 = vst [vmem:[#allocation3] sm:$0x1] %v241_v22 }
  0x6e   : > { %v246_v23 = vld [vmem:[#allocation2] sm:$0x1] }
  0x6f   : > { %v248_v24 = vsel %vm247_vm0, %v246_v23, 0.0 }
  0x70   : > { %249 = vadd.xlane.f32.xlu0 %v248_v24  ;;  %v260_v25 = vld [vmem:[#allocation3] sm:$0x1] }
  0x71   : > { %v261_v26 = vsel %vm247_vm0, %v260_v25, 0.0 }
  0x74   : > { %262 = vadd.xlane.f32.xlu0 %v261_v26 }
  0xfd   : > { %v250_v27 = vpop.xlane.xlu0 %249 }
  0xfe   : > { %v251_v28 = vrot.slane %v250_v27, 4 }
 0x100   : > { %v252_v29 = vadd.f32 %v251_v28, %v250_v27 }
 0x101   : > { %v263_v30 = vpop.xlane.xlu0 %262 }
 0x102   : > { %v253_v31 = vrot.slane %v252_v29, 2  ;;  %v264_v32 = vrot.slane %v263_v30, 4 }
 0x104   : > { %v265_v33 = vadd.f32 %v264_v32, %v263_v30  ;;  %v254_v34 = vadd.f32 %v253_v31, %v252_v29 }
 0x106   : > { %v266_v35 = vrot.slane %v265_v33, 2  ;;  %v255_v36 = vrot.slane %v254_v34, 1 }
 0x108   : > { %v267_v37 = vadd.f32 %v266_v35, %v265_v33  ;;  %v256_v38 = vadd.f32 %v255_v36, %v254_v34 }
 0x10a   : > { %406 = vpush %v256_v38  ;;  %v268_v39 = vrot.slane %v267_v37, 1 }
 0x10c   : > { %v269_v40 = vadd.f32 %v268_v39, %v267_v37 }
 0x10e   : > { %408 = vpush %v269_v40 }
 0x13b   : > { %s407_s21 = spop %406 }
 0x13c   : > { %s258_s30 = smul.f32 2.0, %s407_s21  ;;  %s548_s21 = scalar_lea.vmem %s547_s16, 32 }
 0x13d   : > { %p550_p12 = scmp.lt.s32.totalorder %s548_s21, %s542_s5 }
 0x13e   : > { %s259_s20 = sadd.f32 1.0, %s258_s30 }
 0x13f   : > { %s409_s7 = spop %408  ;;  %p551_p1 = por %p550_p12, %p549_p10 }
 0x140   : > { %s271_s19 = sadd.f32 1.0, %s409_s7 }
 0x141   : > { %p552_p2 = pnand %p551_p1, %p545_p4 }
 0x142   : > { %v272_v41 = vstv %s271_s19 }
 0x143   : > { %480 = vrcp.f32 %v272_v41 }
 0x14d   : > { %v481_v42 = vpop.eup %480 }
 0x14e   : > { %410 = vpush %v481_v42 }
 0x17f   : > { %s411_s27 = spop %410 }
 0x180   : > { %s275_s29 = smul.f32 %s411_s27, %s259_s20 }
 0x182   : > { %s276_s3 = ssub.f32 1.0, %s275_s29 }
 0x184   : > { %v277_v43 = vstv %s276_s3 }
 0x185   : > { %279 = vst [vmem:[%s212_s25] sm:$0x1] %v277_v43 }
 0x186   : > { %555 = shalt.err (!%p552_p2)
}
 0x187   : > { %s556_s15 = scalar_lea.hbm %s821_s4, 16  ;;  %s560_s30 = scalar_lea.hbm %s872_s2, 32 }
 0x188   : > { %p557_p9 = scmp.ne.s32.totalorder %s821_s4, %s556_s15  ;;  %p561_p6 = scmp.lt.u32.totalorder %s821_s4, %s872_s2 }
 0x189   : > { %p562_p13 = scmp.lt.u32.totalorder %s560_s30, %s556_s15  ;;  %p564_p8 = scmp.lt.u32.totalorder %s556_s15, %s821_s4 }
 0x18a   : > { %p558_p11 = pnand %p557_p9, %p885_p0 }
 0x18b   : > { %p563_p5 = por %p562_p13, %p561_p6 }
 0x18c   : > { %p559_p3 = pneg %p558_p11 }
 0x18d   : > { %p565_p7 = por %p564_p8, %p563_p5 }
 0x18f   : > { %p566_p4 = pnand %p565_p7, %p559_p3 }
 0x191   : > { %569 = shalt.err (!%p566_p4)
}
 0x192   : > { %416 = dma.vmem_to_hbm [thread:$0]  (%p885_p0), %s823_s26, 16, %s821_s4, %s281_s6  }
 0x193 PF: > { %s305_s28 = sand.u32 1, %s608_s9   ;;  %p886_p10 = scmp.ne.s32.totalorder %s878_s24, 0 }
 0x194   : > { %p887_p12 = scmp.ge.s32.totalorder %s628_s14, 2  ;;  %s306_s29 = scalar_lea.sflag [#allocation6], %s305_s28 }
 0x196   : > { %p426_p1 = pnand %p887_p12, %p886_p10 }
 0x198   : > { %603 = dma.done.wait (!%p426_p1), %s306_s29, 16  }
 0x199   : > { %605 = vsyncadd (!%p426_p1), %s306_s29, 4294967280  ;;  %s21_s14 = sadd.s32 1, %s628_s14   ;;  %s888_s9 = smov %s612_s10 }
 0x19a   : > { %p18_p2 = scmp.ge.s32.totalorder %s21_s14, 4   ;;  %s889_s10 = smov %s616_s11 }
 0x19b   : > { %s890_s11 = smov %s705_s23  ;;  %s891_s12 = smov %s624_s13 }
 0x19c   : > { %s892_s13 = smov %s894_s17  ;;  %20 = sbr.rel (!%p18_p2) target bundleno = 8 (0x8), region = 94 }
 0x1a3   :  { %310 = vsyncpa [#allocation5], 1 }
 0x1a4   :  { %312 = vsyncpa [#allocation5 + $0x1], 1 }
 0x1a5   :  { %313 = vsyncpa [#allocation8], 1 }
 0x1a6   :  { %315 = vsyncpa [#allocation8 + $0x1], 1 }
 0x1a7   :  { %316 = vsyncpa [#allocation6], 1 }
 0x1a8   :  { %318 = vsyncpa [#allocation6 + $0x1], 1 }

</bundles_post_ra>
